<compile_context>
chip_gen: v6e
topology: v6e:2x2x1
jax: 0.10.0
libtpu: 0.0.40
codegen_flags: <defaults>
</compile_context>

<pallas_src>
import functools

import jax
import jax.numpy as jnp
from jax import lax
from jax.experimental import pallas as pl
from jax.experimental.pallas import tpu as pltpu

MIN_NORM = 1e-15          # hgcn pmath min-norm clamp
BALL_EPS_F32 = 4e-3       # projection epsilon for float32
CURVATURE = 1.0           # ball curvature c (and k=1.0 passed to project)


def _hyp_act_kernel(x_ref, o_ref, *, seg, seg_dim):
    """One tile. seg == 1: tile is (rows, D).  seg > 1: tile is (rows, seg*seg_dim)
    where each packed row holds `seg` original rows side by side along lanes."""
    f32 = jnp.float32
    x = x_ref[...]                               # native dtype (f32 or bf16)
    rows = x.shape[0]
    sqrt_c = f32(CURVATURE) ** 0.5
    inv_sqrt_c = f32(1.0) / sqrt_c

    def seg_sum_sq(v):
        # f32 sum of squares per original row.  seg == 1 -> (rows, 1) column (keeps the
        # scalar chain narrow for large D).  seg > 1 -> (rows, seg*seg_dim), already
        # broadcast across each segment's lanes (same vreg count as a (rows, seg)
        # column, so the transcendental chain costs the same).
        vf = v if v.dtype == f32 else v.astype(f32)
        sq = vf * vf                              # one dense full-width multiply
        if seg == 1:
            return jnp.sum(sq, axis=-1, keepdims=True)
        parts = []
        for j in range(seg):
            s = jnp.sum(sq[:, j * seg_dim:(j + 1) * seg_dim], axis=-1, keepdims=True)
            parts.append(jnp.broadcast_to(s, (rows, seg_dim)))
        return jnp.concatenate(parts, axis=-1)

    # ---- logmap0 scalars (per original row)
    ss = jnp.maximum(seg_sum_sq(x), f32(MIN_NORM * MIN_NORM))
    inv_n = lax.rsqrt(ss)                                     # EUP
    n = ss * inv_n                                            # ||x|| without a 2nd sqrt
    z = jnp.clip(sqrt_c * n, -1.0 + 1e-7, 1.0 - 1e-7)
    artanh_z = 0.5 * (jnp.log1p(z) - jnp.log1p(-z))
    scale_log = artanh_z * inv_n * inv_sqrt_c

    # ---- activation (ReLU) fused with the logmap scaling; stays in input dtype.
    xt = jnp.maximum(x * scale_log.astype(x.dtype), 0)

    # ---- expmap0 + project, fused analytically:
    #   ||expmap0(xt)|| = tanh(sqrt_c*||xt||)/sqrt_c, so projecting onto the ball of
    #   radius (1-eps)/sqrt_c is just clipping tanh(.) at (1 - eps).
    ss_t = jnp.maximum(seg_sum_sq(xt), f32(MIN_NORM * MIN_NORM))
    inv_n_t = lax.rsqrt(ss_t)
    n_t = ss_t * inv_n_t
    t = jnp.tanh(sqrt_c * n_t)
    t = jnp.minimum(t, f32(1.0 - BALL_EPS_F32))               # projection clip
    scale_out = t * inv_n_t * inv_sqrt_c

    o_ref[...] = (xt * scale_out.astype(x.dtype)).astype(o_ref.dtype)


def hyp_act(x, *, block_rows=None, target_tile_bytes=2 * 1024 * 1024,
            min_grid_steps=8):
    """x: (N, D) points on the Poincare ball (f32 or bf16). Returns (N, D).

    target_tile_bytes: ~2 MiB default works on v5e/v6e/v7x; bump to ~4-6 MiB on v7x
    (fast HBM, per-step overhead matters more) or drop to ~1 MiB for bf16 on v5e.
    """
    N, D = x.shape

    # ---- lane packing for narrow feature dims: (N, D) -> (N//g, g*D), a free
    # row-major merge in HBM (no copy).  Fall back to the plain layout otherwise.
    g = 1
    if D < 128 and D >= 8 and 128 % D == 0 and N % (128 // D) == 0:
        g = 128 // D
    x2 = x.reshape(N // g, g * D) if g > 1 else x
    rows, width = x2.shape
    bytes_per_row = width * x.dtype.itemsize

    if block_rows is None:
        block_rows = max(8, (target_tile_bytes // bytes_per_row) // 8 * 8)
        # Keep >= min_grid_steps grid steps so v7x's two TensorCores both get work,
        # but never shrink a tile below ~1 MiB (per-grid-step overhead ~0.35 us).
        min_block_rows = max(8, ((1 << 20) // bytes_per_row) // 8 * 8)
        steps_cap = max(min_block_rows, (rows // min_grid_steps) // 8 * 8)
        block_rows = min(block_rows, steps_cap)
    block_rows = max(8, (block_rows // 8) * 8)                 # sublane-aligned
    block_rows = min(block_rows, pl.cdiv(rows, 8) * 8)

    grid = (pl.cdiv(rows, block_rows),)   # trailing partial block handled by Pallas

    kernel = functools.partial(_hyp_act_kernel, seg=g, seg_dim=D)
    out = pl.pallas_call(
        kernel,
        out_shape=jax.ShapeDtypeStruct((rows, width), x.dtype),
        grid_spec=pltpu.PrefetchScalarGridSpec(
            num_scalar_prefetch=0,
            grid=grid,
            in_specs=[pl.BlockSpec((block_rows, width), lambda i: (i, 0))],
            out_specs=pl.BlockSpec((block_rows, width), lambda i: (i, 0)),
        ),
        compiler_params=pltpu.CompilerParams(
            dimension_semantics=("parallel",),
            vmem_limit_bytes=40 * 1024 * 1024,
        ),
        cost_estimate=pl.CostEstimate(
            flops=8 * N * D,
            transcendentals=6 * N,
            bytes_accessed=2 * N * D * x.dtype.itemsize,
        ),
    )(x2)
    return out.reshape(N, D) if g > 1 else out


def _hyp_act_ref(x):
    """Pure-JAX reference (HGCN convention) for correctness checking."""
    x = x.astype(jnp.float32)
    sqrt_c = jnp.sqrt(jnp.float32(CURVATURE))
    xn = jnp.maximum(jnp.linalg.norm(x, axis=-1, keepdims=True), MIN_NORM)
    z = jnp.clip(sqrt_c * xn, -1.0 + 1e-7, 1.0 - 1e-7)
    x_log = x * jnp.arctanh(z) / (sqrt_c * xn)
    xt = jax.nn.relu(x_log)
    un = jnp.maximum(jnp.linalg.norm(xt, axis=-1, keepdims=True), MIN_NORM)
    y = jnp.tanh(sqrt_c * un) * xt / (sqrt_c * un)
    yn = jnp.maximum(jnp.linalg.norm(y, axis=-1, keepdims=True), MIN_NORM)
    maxnorm = (1.0 - BALL_EPS_F32) / sqrt_c
    return jnp.where(yn > maxnorm, y / yn * maxnorm, y)


if __name__ == "__main__":
    key = jax.random.PRNGKey(0)
    N, D = 64, 32  # nodes x hidden features (GCN-style input), small demo shapes

    # Mix of points well inside the ball and points near the boundary so the
    # projection (norm clip) path is exercised too.
    k1, k2 = jax.random.split(key)
    x_inner = 0.1 * jax.random.normal(k1, (N // 2, D), dtype=jnp.float32)
    v = jax.random.normal(k2, (N // 2, D), dtype=jnp.float32)
    x_edge = 0.999 * v / jnp.linalg.norm(v, axis=-1, keepdims=True)
    x = jnp.concatenate([x_inner, x_edge], axis=0)

    out = jax.block_until_ready(hyp_act(x))                   # lane-packed path (g=4)
    ref = _hyp_act_ref(x)
    assert out.shape == (N, D)
    assert jnp.allclose(out, ref, atol=1e-5, rtol=1e-5), "mismatch vs reference (packed)"

    # Unpacked fallback (N not a multiple of the pack factor) with a trailing partial
    # block -- exercises the pad-free grid clipping.
    x_odd = 0.1 * jax.random.normal(key, (50, D), dtype=jnp.float32)
    out_odd = jax.block_until_ready(hyp_act(x_odd, block_rows=16))
    assert out_odd.shape == (50, D)
    assert jnp.allclose(out_odd, _hyp_act_ref(x_odd), atol=1e-5, rtol=1e-5)

    # Packed path with a trailing partial block (88 rows -> 22 packed rows, block 8).
    x_part = 0.2 * jax.random.normal(k2, (88, D), dtype=jnp.float32)
    out_part = jax.block_until_ready(hyp_act(x_part, block_rows=8))
    assert out_part.shape == (88, D)
    assert jnp.allclose(out_part, _hyp_act_ref(x_part), atol=1e-5, rtol=1e-5)

    print("KERNEL_OK")
</pallas_src>

<mosaic_0001>
module attributes {stable_mosaic.version = 11 : i64} {
  func.func @_hyp_act_kernel(%arg0: i32, %arg1: memref<16x128xf32, #tpu.memory_space<vmem>>, %arg2: memref<16x128xf32, #tpu.memory_space<vmem>>) attributes {dimension_semantics = [#tpu.dimension_semantics<parallel>], iteration_bounds = array<i64: 1>, scalar_prefetch = 0 : i64, scratch_operands = 0 : i64, tpu.core_type = #tpu.core_type<tc>, window_params = [{transform_indices = @transform_0, window_bounds = array<i64: 16, 128>}, {transform_indices = @transform_1, window_bounds = array<i64: 16, 128>}]} {
    %c0 = arith.constant 0 : index
    %c0_0 = arith.constant 0 : index
    %0 = vector.load %arg1[%c0, %c0_0] : memref<16x128xf32, #tpu.memory_space<vmem>>, vector<16x128xf32>
    %cst = arith.constant 1.000000e+00 : f32
    %cst_1 = arith.constant 5.000000e-01 : f32
    %1 = math.powf %cst, %cst_1 : f32
    %cst_2 = arith.constant 1.000000e+00 : f32
    %2 = arith.divf %cst_2, %1 : f32
    %3 = arith.mulf %0, %0 : vector<16x128xf32>
    %4 = vector.extract_strided_slice %3 {offsets = [0, 0], sizes = [16, 32], strides = [1, 1]} : vector<16x128xf32> to vector<16x32xf32>
    %cst_3 = arith.constant dense<0.000000e+00> : vector<16xf32>
    %5 = vector.multi_reduction <add>, %4, %cst_3 [1] : vector<16x32xf32> to vector<16xf32>
    %6 = vector.shape_cast %5 : vector<16xf32> to vector<16x1xf32>
    %7 = vector.shape_cast %6 : vector<16x1xf32> to vector<16x1xf32>
    %8 = vector.broadcast %7 : vector<16x1xf32> to vector<16x32xf32>
    %9 = vector.extract_strided_slice %3 {offsets = [0, 32], sizes = [16, 32], strides = [1, 1]} : vector<16x128xf32> to vector<16x32xf32>
    %cst_4 = arith.constant dense<0.000000e+00> : vector<16xf32>
    %10 = vector.multi_reduction <add>, %9, %cst_4 [1] : vector<16x32xf32> to vector<16xf32>
    %11 = vector.shape_cast %10 : vector<16xf32> to vector<16x1xf32>
    %12 = vector.shape_cast %11 : vector<16x1xf32> to vector<16x1xf32>
    %13 = vector.broadcast %12 : vector<16x1xf32> to vector<16x32xf32>
    %14 = vector.extract_strided_slice %3 {offsets = [0, 64], sizes = [16, 32], strides = [1, 1]} : vector<16x128xf32> to vector<16x32xf32>
    %cst_5 = arith.constant dense<0.000000e+00> : vector<16xf32>
    %15 = vector.multi_reduction <add>, %14, %cst_5 [1] : vector<16x32xf32> to vector<16xf32>
    %16 = vector.shape_cast %15 : vector<16xf32> to vector<16x1xf32>
    %17 = vector.shape_cast %16 : vector<16x1xf32> to vector<16x1xf32>
    %18 = vector.broadcast %17 : vector<16x1xf32> to vector<16x32xf32>
    %19 = vector.extract_strided_slice %3 {offsets = [0, 96], sizes = [16, 32], strides = [1, 1]} : vector<16x128xf32> to vector<16x32xf32>
    %cst_6 = arith.constant dense<0.000000e+00> : vector<16xf32>
    %20 = vector.multi_reduction <add>, %19, %cst_6 [1] : vector<16x32xf32> to vector<16xf32>
    %21 = vector.shape_cast %20 : vector<16xf32> to vector<16x1xf32>
    %22 = vector.shape_cast %21 : vector<16x1xf32> to vector<16x1xf32>
    %23 = vector.broadcast %22 : vector<16x1xf32> to vector<16x32xf32>
    %24 = tpu.concatenate %8, %13, %18, %23 in 1 : vector<16x32xf32>, vector<16x32xf32>, vector<16x32xf32>, vector<16x32xf32> -> vector<16x128xf32>
    %cst_7 = arith.constant 1.000000e-30 : f32
    %25 = vector.broadcast %cst_7 : f32 to vector<16x128xf32>
    %26 = arith.maximumf %24, %25 : vector<16x128xf32>
    %27 = math.rsqrt %26 : vector<16x128xf32>
    %28 = arith.mulf %26, %27 : vector<16x128xf32>
    %29 = vector.broadcast %1 : f32 to vector<16x128xf32>
    %30 = arith.mulf %29, %28 : vector<16x128xf32>
    %cst_8 = arith.constant -0.99999988 : f32
    %cst_9 = arith.constant 0.99999988 : f32
    %31 = vector.broadcast %cst_8 : f32 to vector<16x128xf32>
    %32 = arith.maximumf %31, %30 : vector<16x128xf32>
    %33 = vector.broadcast %cst_9 : f32 to vector<16x128xf32>
    %34 = arith.minimumf %33, %32 : vector<16x128xf32>
    %35 = math.log1p %34 : vector<16x128xf32>
    %cst_10 = arith.constant 0.000000e+00 : f32
    %36 = vector.broadcast %cst_10 : f32 to vector<16x128xf32>
    %37 = arith.subf %36, %34 : vector<16x128xf32>
    %38 = math.log1p %37 : vector<16x128xf32>
    %39 = arith.subf %35, %38 : vector<16x128xf32>
    %cst_11 = arith.constant 5.000000e-01 : f32
    %40 = vector.broadcast %cst_11 : f32 to vector<16x128xf32>
    %41 = arith.mulf %40, %39 : vector<16x128xf32>
    %42 = arith.mulf %41, %27 : vector<16x128xf32>
    %43 = vector.broadcast %2 : f32 to vector<16x128xf32>
    %44 = arith.mulf %42, %43 : vector<16x128xf32>
    %45 = arith.mulf %0, %44 : vector<16x128xf32>
    %cst_12 = arith.constant 0.000000e+00 : f32
    %46 = vector.broadcast %cst_12 : f32 to vector<16x128xf32>
    %47 = arith.maximumf %45, %46 : vector<16x128xf32>
    %48 = arith.mulf %47, %47 : vector<16x128xf32>
    %49 = vector.extract_strided_slice %48 {offsets = [0, 0], sizes = [16, 32], strides = [1, 1]} : vector<16x128xf32> to vector<16x32xf32>
    %cst_13 = arith.constant dense<0.000000e+00> : vector<16xf32>
    %50 = vector.multi_reduction <add>, %49, %cst_13 [1] : vector<16x32xf32> to vector<16xf32>
    %51 = vector.shape_cast %50 : vector<16xf32> to vector<16x1xf32>
    %52 = vector.shape_cast %51 : vector<16x1xf32> to vector<16x1xf32>
    %53 = vector.broadcast %52 : vector<16x1xf32> to vector<16x32xf32>
    %54 = vector.extract_strided_slice %48 {offsets = [0, 32], sizes = [16, 32], strides = [1, 1]} : vector<16x128xf32> to vector<16x32xf32>
    %cst_14 = arith.constant dense<0.000000e+00> : vector<16xf32>
    %55 = vector.multi_reduction <add>, %54, %cst_14 [1] : vector<16x32xf32> to vector<16xf32>
    %56 = vector.shape_cast %55 : vector<16xf32> to vector<16x1xf32>
    %57 = vector.shape_cast %56 : vector<16x1xf32> to vector<16x1xf32>
    %58 = vector.broadcast %57 : vector<16x1xf32> to vector<16x32xf32>
    %59 = vector.extract_strided_slice %48 {offsets = [0, 64], sizes = [16, 32], strides = [1, 1]} : vector<16x128xf32> to vector<16x32xf32>
    %cst_15 = arith.constant dense<0.000000e+00> : vector<16xf32>
    %60 = vector.multi_reduction <add>, %59, %cst_15 [1] : vector<16x32xf32> to vector<16xf32>
    %61 = vector.shape_cast %60 : vector<16xf32> to vector<16x1xf32>
    %62 = vector.shape_cast %61 : vector<16x1xf32> to vector<16x1xf32>
    %63 = vector.broadcast %62 : vector<16x1xf32> to vector<16x32xf32>
    %64 = vector.extract_strided_slice %48 {offsets = [0, 96], sizes = [16, 32], strides = [1, 1]} : vector<16x128xf32> to vector<16x32xf32>
    %cst_16 = arith.constant dense<0.000000e+00> : vector<16xf32>
    %65 = vector.multi_reduction <add>, %64, %cst_16 [1] : vector<16x32xf32> to vector<16xf32>
    %66 = vector.shape_cast %65 : vector<16xf32> to vector<16x1xf32>
    %67 = vector.shape_cast %66 : vector<16x1xf32> to vector<16x1xf32>
    %68 = vector.broadcast %67 : vector<16x1xf32> to vector<16x32xf32>
    %69 = tpu.concatenate %53, %58, %63, %68 in 1 : vector<16x32xf32>, vector<16x32xf32>, vector<16x32xf32>, vector<16x32xf32> -> vector<16x128xf32>
    %cst_17 = arith.constant 1.000000e-30 : f32
    %70 = vector.broadcast %cst_17 : f32 to vector<16x128xf32>
    %71 = arith.maximumf %69, %70 : vector<16x128xf32>
    %72 = math.rsqrt %71 : vector<16x128xf32>
    %73 = arith.mulf %71, %72 : vector<16x128xf32>
    %74 = vector.broadcast %1 : f32 to vector<16x128xf32>
    %75 = arith.mulf %74, %73 : vector<16x128xf32>
    %76 = math.tanh %75 : vector<16x128xf32>
    %cst_18 = arith.constant 0.995999991 : f32
    %77 = vector.broadcast %cst_18 : f32 to vector<16x128xf32>
    %78 = arith.minimumf %76, %77 : vector<16x128xf32>
    %79 = arith.mulf %78, %72 : vector<16x128xf32>
    %80 = vector.broadcast %2 : f32 to vector<16x128xf32>
    %81 = arith.mulf %79, %80 : vector<16x128xf32>
    %82 = arith.mulf %47, %81 : vector<16x128xf32>
    %c0_19 = arith.constant 0 : index
    %c0_20 = arith.constant 0 : index
    %83 = vector.load %arg2[%c0_19, %c0_20] : memref<16x128xf32, #tpu.memory_space<vmem>>, vector<16x128xf32>
    tpu.vector_store %arg2[%c0_19, %c0_20], %82 {strides = array<i32>} : memref<16x128xf32, #tpu.memory_space<vmem>>, vector<16x128xf32>,
    return
  }
  func.func @transform_0(%arg0: i32) -> (i32, i32) {
    %c0_i32 = arith.constant 0 : i32
    %c0_i32_0 = arith.constant 0 : i32
    return %arg0, %c0_i32 : i32, i32
  }
  func.func @transform_1(%arg0: i32) -> (i32, i32) {
    %c0_i32 = arith.constant 0 : i32
    %c0_i32_0 = arith.constant 0 : i32
    return %arg0, %c0_i32 : i32, i32
  }
}

</mosaic_0001>

<bundles_post_ra>
// kernel: tpu_custom_call.1
= control target key start
LH: loop header
LB: loop body
LE: loop exit
PB: predicated region body
PF: predicated region fallthrough
CT: control target
= control target key end

     0   :  { %6 = vsyncpa [#allocation3], 0  ;;  %s385_s0 = inlined_call_operand.hbm [shape: f32[16,128], index: 0, kind: input, shape index: {}]   ;;  %s386_s1 = inlined_call_operand.hbm [shape: f32[16,128], index: 1, kind: output, shape index: {}]  }
   0x1   :  { %7 = vsyncpa [#allocation4], 0  ;;  %s296_s6 = smov [#allocation2]  }
   0x2   :  { %s13_s7 = sshll.u32 %s296_s6, 4  ;;  %s14_s7 = int_to_ptr.vmem [resolvable:$true] %s13_s7 }
   0x3   :  { %s260_s8 = scalar_lea.vmem %s14_s7, 256  ;;  %p265_p1 = scmp.lt.s32.totalorder %s14_s7, %s14_s7 }
   0x4   :  { %p261_p0 = scmp.ne.s32.totalorder %s14_s7, %s260_s8  ;;  %p266_p2 = scmp.lt.s32.totalorder %s260_s8, %s260_s8 }
   0x6   :  { %p267_p3 = por %p266_p2, %p265_p1 }
   0x8   :  { %p268_p4 = pnand %p267_p3, %p261_p0 }
   0xa   :  { %271 = shalt.err (!%p268_p4)
}
   0xb   :  { %s297_s9 = smov 128   ;;  %s298_s10 = smov 8  }
   0xc   :  { %19 = dma.hbm_to_vmem [thread:$0]  %s385_s0, 256, %s14_s7, [#allocation3], %s297_s9, %s297_s9, %s298_s10  }
   0xd   :  { %292 = dma.done.wait [#allocation3], 256  }
   0xe   :  { %293 = vsyncadd [#allocation3], 4294967040  ;;  %v319_v0 = vld [vmem:[#allocation2] sm:$0xff]  ;;  %v321_v1 = vld [vmem:[#allocation2 + $0x8] sm:$0xff]  ;;  %s299_s13 = smov 96   ;;  %s300_s14 = smov 64  }
   0xf   :  { %v25_v2 = vmul.f32 %v319_v0, %v319_v0  ;;  %v26_v3 = vmul.f32 %v321_v1, %v321_v1  ;;  %s301_s0 = smov 32   ;;  %vm27_vm0 = vcmask 261120   ;;  %vm74_vm1 = vcmask 523264   ;;  %s302_s15 = smov [#allocation5]  }
  0x10   :  { %vm77_vm2 = vcmask 785408   ;;  %s211_s16 = sshll.u32 %s302_s15, 4  ;;  %s212_s16 = int_to_ptr.vmem [resolvable:$true] %s211_s16 }
  0x11   :  { %36 = vrot.lane.b32.xlu0 %v25_v2, %s299_s13  ;;  %48 = vrot.lane.b32.xlu1 %v25_v2, %s300_s14  ;;  %v28_v4 = vsel %vm27_vm0, %v25_v2, 0.0  ;;  %v31_v5 = vsel %vm27_vm0, %v26_v3, 0.0  ;;  %s272_s17 = scalar_lea.vmem %s212_s16, 256  ;;  %p277_p6 = scmp.lt.s32.totalorder %s212_s16, %s212_s16 }
  0x12   :  { %p273_p5 = scmp.ne.s32.totalorder %s212_s16, %s272_s17  ;;  %p278_p7 = scmp.lt.s32.totalorder %s272_s17, %s272_s17 }
  0x14   :  { %p279_p8 = por %p278_p7, %p277_p6 }
  0x15   :  { %38 = vrot.lane.b32.xlu0 %v26_v3, %s299_s13  ;;  %50 = vrot.lane.b32.xlu1 %v26_v3, %s300_s14 }
  0x16   :  { %p280_p9 = pnand %p279_p8, %p273_p5 }
  0x19   :  { %60 = vrot.lane.b32.xlu0 %v25_v2, %s301_s0  ;;  %62 = vrot.lane.b32.xlu1 %v26_v3, %s301_s0 }
  0x38   :  { %29 = vadd.xlane.f32.xlu0 %v28_v4 }
  0x3d   :  { %32 = vadd.xlane.f32.xlu1 %v31_v5 }
  0x83   :  { %v37_v6 = vpop.permute.xlu0 %36  ;;  %v49_v7 = vpop.permute.xlu1 %48 }
  0x84   :  { %v42_v8 = vsel %vm27_vm0, %v37_v6, 0.0  ;;  %v54_v9 = vsel %vm27_vm0, %v49_v7, 0.0 }
  0x85   :  { %43 = vadd.xlane.f32.xlu0 %v42_v8  ;;  %55 = vadd.xlane.f32.xlu1 %v54_v9 }
  0x87   :  { %v39_v10 = vpop.permute.xlu0 %38  ;;  %v51_v11 = vpop.permute.xlu1 %50 }
  0x88   :  { %v45_v12 = vsel %vm27_vm0, %v39_v10, 0.0  ;;  %v57_v13 = vsel %vm27_vm0, %v51_v11, 0.0 }
  0x89   :  { %46 = vadd.xlane.f32.xlu0 %v45_v12 }
  0x8b   :  { %v61_v14 = vpop.permute.xlu0 %60  ;;  %v63_v15 = vpop.permute.xlu1 %62 }
  0x8c   :  { %v66_v16 = vsel %vm27_vm0, %v61_v14, 0.0  ;;  %v69_v17 = vsel %vm27_vm0, %v63_v15, 0.0 }
  0x8d   :  { %67 = vadd.xlane.f32.xlu1 %v66_v16  ;;  %58 = vadd.xlane.f32.xlu0 %v57_v13 }
  0x91   :  { %70 = vadd.xlane.f32.xlu0 %v69_v17 }
  0xc1   :  { %v30_v18 = vpop.xlane.xlu0 %29 }
  0xc6   :  { %v33_v19 = vpop.xlane.xlu1 %32 }
 0x10e   :  { %v44_v20 = vpop.xlane.xlu0 %43  ;;  %v56_v21 = vpop.xlane.xlu1 %55 }
 0x10f   :  { %v72_v23 = vsel %vm27_vm0, %v30_v18, %v44_v20 }
 0x110   :  { %v75_v24 = vsel %vm74_vm1, %v72_v23, %v56_v21 }
 0x112   :  { %v47_v22 = vpop.xlane.xlu0 %46 }
 0x113   :  { %v73_v29 = vsel %vm27_vm0, %v33_v19, %v47_v22 }
 0x116   :  { %v68_v25 = vpop.xlane.xlu1 %67  ;;  %v59_v26 = vpop.xlane.xlu0 %58 }
 0x117   :  { %v78_v27 = vsel %vm77_vm2, %v75_v24, %v68_v25  ;;  %v76_v30 = vsel %vm74_vm1, %v73_v29, %v59_v26 }
 0x118   :  { %v80_v28 = vmax.f32 %v78_v27, 1e-30 }
 0x11a   :  { %232 = vrsqrt.f32 %v80_v28  ;;  %v71_v31 = vpop.xlane.xlu0 %70 }
 0x11b   :  { %v79_v32 = vsel %vm77_vm2, %v76_v30, %v71_v31 }
 0x11c   :  { %v81_v33 = vmax.f32 %v79_v32, 1e-30 }
 0x11e   :  { %234 = vrsqrt.f32 %v81_v33 }
 0x127   :  { %v233_v34 = vpop.eup %232 }
 0x128   :  { %v84_v35 = vmul.f32 %v233_v34, %v80_v28 }
 0x12a   :  { %v223_v36 = vclamps-f32 %v84_v35, 0.9999999 }
 0x12b   :  { %v235_v37 = vpop.eup %234 }
 0x12c   :  { %v90_v38 = vadd.f32 1.0, %v223_v36  ;;  %v108_v39 = vsub.f32 0.0, %v223_v36  ;;  %v85_v40 = vmul.f32 %v235_v37, %v81_v33  ;;  %v93_v46 = vmul.f32 -0.5, %v223_v36 }
 0x12d   :  { %v96_v51 = vand.u32 2147483647, %v223_v36 }
 0x12e   :  { %236 = vlog2.f32 %v90_v38  ;;  %v110_v41 = vadd.f32 1.0, %v108_v39  ;;  %v224_v42 = vclamps-f32 %v85_v40, 0.9999999  ;;  %v113_v47 = vmul.f32 -0.5, %v108_v39 }
 0x12f   :  { %v94_v48 = vadd.f32 1.0, %v93_v46  ;;  %v116_v53 = vand.u32 2147483647, %v108_v39  ;;  %vm97_vm3 = vcmp.lt.f32.partialorder %v96_v51, 0.0004427343 }
 0x130   :  { %238 = vlog2.f32 %v110_v41  ;;  %v99_v43 = vadd.f32 1.0, %v224_v42  ;;  %v109_v44 = vsub.f32 0.0, %v224_v42  ;;  %v114_v49 = vadd.f32 1.0, %v113_v47 }
 0x131   :  { %v102_v52 = vmul.f32 -0.5, %v224_v42  ;;  %v95_v57 = vmul.f32 %v223_v36, %v94_v48  ;;  %vm117_vm4 = vcmp.lt.f32.partialorder %v116_v53, 0.0004427343  ;;  %v105_v63 = vand.u32 2147483647, %v224_v42 }
 0x132   :  { %240 = vlog2.f32 %v99_v43  ;;  %v119_v45 = vadd.f32 1.0, %v109_v44  ;;  %v122_v54 = vmul.f32 -0.5, %v109_v44  ;;  %v115_v59 = vmul.f32 %v114_v49, %v108_v39 }
 0x133   :  { %v103_v60 = vadd.f32 1.0, %v102_v52  ;;  %v125_v4 = vand.u32 2147483647, %v109_v44  ;;  %vm106_vm5 = vcmp.lt.f32.partialorder %v105_v63, 0.0004427343 }
 0x134   :  { %242 = vlog2.f32 %v119_v45  ;;  %v123_v61 = vadd.f32 1.0, %v122_v54 }
 0x135   :  { %v104_v8 = vmul.f32 %v224_v42, %v103_v60  ;;  %vm126_vm6 = vcmp.lt.f32.partialorder %v125_v4, 0.0004427343 }
 0x136   :  { %v124_v11 = vmul.f32 %v123_v61, %v109_v44 }
 0x13b   :  { %v237_v50 = vpop.eup %236 }
 0x13c   :  { %v92_v55 = vmul.f32 0.6931472, %v237_v50 }
 0x13d   :  { %v239_v56 = vpop.eup %238 }
 0x13e   :  { %v112_v58 = vmul.f32 0.6931472, %v239_v56  ;;  %v98_v2 = vsel %vm97_vm3, %v95_v57, %v92_v55 }
 0x13f   :  { %v241_v62 = vpop.eup %240 }
 0x140   :  { %v118_v3 = vsel %vm117_vm4, %v115_v59, %v112_v58  ;;  %v101_v6 = vmul.f32 0.6931472, %v241_v62 }
 0x141   :  { %v128_v5 = vsub.f32 %v98_v2, %v118_v3  ;;  %v243_v7 = vpop.eup %242 }
 0x142   :  { %v121_v10 = vmul.f32 0.6931472, %v243_v7  ;;  %v107_v13 = vsel %vm106_vm5, %v104_v8, %v101_v6 }
 0x143   :  { %v130_v9 = vmul.f32 0.5, %v128_v5 }
 0x144   :  { %v127_v14 = vsel %vm126_vm6, %v124_v11, %v121_v10 }
 0x145   :  { %v132_v12 = vmul.f32 %v233_v34, %v130_v9  ;;  %v129_v15 = vsub.f32 %v107_v13, %v127_v14 }
 0x147   :  { %v134_v16 = vmul.f32 %v132_v12, %v319_v0  ;;  %v131_v17 = vmul.f32 0.5, %v129_v15 }
 0x149   :  { %v348_v18 = vmax.f32 %v134_v16, 0.0  ;;  %v133_v19 = vmul.f32 %v235_v37, %v131_v17 }
 0x14b   :  { %v138_v20 = vmul.f32 %v348_v18, %v348_v18  ;;  %v135_v21 = vmul.f32 %v133_v19, %v321_v1 }
 0x14d   :  { %148 = vrot.lane.b32.xlu1 %v138_v20, %s299_s13  ;;  %v354_v22 = vmax.f32 %v135_v21, 0.0  ;;  %v140_v0 = vsel %vm27_vm0, %v138_v20, 0.0 }
 0x14f   :  { %v139_v23 = vmul.f32 %v354_v22, %v354_v22 }
 0x151   :  { %160 = vrot.lane.b32.xlu1 %v138_v20, %s300_s14  ;;  %150 = vrot.lane.b32.xlu0 %v139_v23, %s299_s13  ;;  %v143_v1 = vsel %vm27_vm0, %v139_v23, 0.0 }
 0x155   :  { %162 = vrot.lane.b32.xlu1 %v139_v23, %s300_s14  ;;  %172 = vrot.lane.b32.xlu0 %v138_v20, %s301_s0 }
 0x159   :  { %174 = vrot.lane.b32.xlu1 %v139_v23, %s301_s0 }
 0x174   :  { %141 = vadd.xlane.f32.xlu0 %v140_v0 }
 0x17d   :  { %144 = vadd.xlane.f32.xlu1 %v143_v1 }
 0x1bf   :  { %v149_v24 = vpop.permute.xlu1 %148 }
 0x1c0   :  { %v154_v25 = vsel %vm27_vm0, %v149_v24, 0.0 }
 0x1c1   :  { %155 = vadd.xlane.f32.xlu0 %v154_v25 }
 0x1c3   :  { %v161_v26 = vpop.permute.xlu1 %160  ;;  %v151_v27 = vpop.permute.xlu0 %150 }
 0x1c4   :  { %v166_v28 = vsel %vm27_vm0, %v161_v26, 0.0  ;;  %v157_v29 = vsel %vm27_vm0, %v151_v27, 0.0 }
 0x1c5   :  { %167 = vadd.xlane.f32.xlu1 %v166_v28  ;;  %158 = vadd.xlane.f32.xlu0 %v157_v29 }
 0x1c7   :  { %v163_v30 = vpop.permute.xlu1 %162  ;;  %v173_v31 = vpop.permute.xlu0 %172 }
 0x1c8   :  { %v169_v32 = vsel %vm27_vm0, %v163_v30, 0.0  ;;  %v178_v33 = vsel %vm27_vm0, %v173_v31, 0.0 }
 0x1c9   :  { %170 = vadd.xlane.f32.xlu0 %v169_v32  ;;  %179 = vadd.xlane.f32.xlu1 %v178_v33 }
 0x1cb   :  { %v175_v34 = vpop.permute.xlu1 %174 }
 0x1cc   :  { %v181_v35 = vsel %vm27_vm0, %v175_v34, 0.0 }
 0x1cd   :  { %182 = vadd.xlane.f32.xlu0 %v181_v35 }
 0x1fd   :  { %v142_v36 = vpop.xlane.xlu0 %141 }
 0x206   :  { %v145_v37 = vpop.xlane.xlu1 %144 }
 0x24a   :  { %v156_v38 = vpop.xlane.xlu0 %155 }
 0x24b   :  { %v184_v41 = vsel %vm27_vm0, %v142_v36, %v156_v38 }
 0x24e   :  { %v168_v39 = vpop.xlane.xlu1 %167  ;;  %v159_v40 = vpop.xlane.xlu0 %158 }
 0x24f   :  { %v186_v42 = vsel %vm74_vm1, %v184_v41, %v168_v39  ;;  %v185_v47 = vsel %vm27_vm0, %v145_v37, %v159_v40 }
 0x252   :  { %v171_v43 = vpop.xlane.xlu0 %170  ;;  %v180_v44 = vpop.xlane.xlu1 %179 }
 0x253   :  { %v188_v45 = vsel %vm77_vm2, %v186_v42, %v180_v44  ;;  %v187_v48 = vsel %vm74_vm1, %v185_v47, %v171_v43 }
 0x254   :  { %v190_v46 = vmax.f32 %v188_v45, 1e-30 }
 0x256   :  { %244 = vrsqrt.f32 %v190_v46  ;;  %v183_v49 = vpop.xlane.xlu0 %182 }
 0x257   :  { %v189_v50 = vsel %vm77_vm2, %v187_v48, %v183_v49 }
 0x258   :  { %v191_v51 = vmax.f32 %v189_v50, 1e-30 }
 0x25a   :  { %246 = vrsqrt.f32 %v191_v51 }
 0x263   :  { %v245_v52 = vpop.eup %244 }
 0x264   :  { %v194_v53 = vmul.f32 %v245_v52, %v190_v46 }
 0x266   :  { %248 = vtanh.f32 %v194_v53 }
 0x267   :  { %v247_v54 = vpop.eup %246 }
 0x268   :  { %v195_v55 = vmul.f32 %v247_v54, %v191_v51 }
 0x26a   :  { %250 = vtanh.f32 %v195_v55 }
 0x273   :  { %v249_v56 = vpop.eup %248 }
 0x274   :  { %v198_v57 = vmin.f32 %v249_v56, 0.996 }
 0x276   :  { %v200_v58 = vmul.f32 %v245_v52, %v198_v57 }
 0x277   :  { %v251_v59 = vpop.eup %250 }
 0x278   :  { %v199_v60 = vmin.f32 %v251_v59, 0.996  ;;  %v202_v61 = vmul.f32 %v200_v58, %v348_v18 }
 0x27a   :  { %v201_v62 = vmul.f32 %v247_v54, %v199_v60  ;;  %204 = vst [vmem:[#allocation5] sm:$0xff] %v202_v61 }
 0x27c   :  { %v203_v63 = vmul.f32 %v201_v62, %v354_v22 }
 0x27e   :  { %205 = vst [vmem:[#allocation5 + $0x8] sm:$0xff] %v203_v63 }
 0x27f   :  { %283 = shalt.err (!%p280_p9)
}
 0x280   :  { %217 = dma.vmem_to_hbm [thread:$0]  %s212_s16, 256, %s386_s1, [#allocation4], %s297_s9, %s297_s9, %s298_s10  }
 0x281   :  { %294 = dma.done.wait [#allocation4], 256  }
 0x282   :  { %295 = vsyncadd [#allocation4], 4294967040 }
 0x283   :  { %221 = vsyncpa [#allocation3], 1 }
 0x284   :  { %222 = vsyncpa [#allocation4], 1 }

</bundles_post_ra>
